<compile_context>
chip_gen: v6e
topology: v6e:2x2x1
jax: 0.10.0
libtpu: 0.0.40
codegen_flags: <defaults>
</compile_context>

<pallas_src>
import functools
import numpy as np
import jax
import jax.numpy as jnp
from jax import lax
from jax.experimental import pallas as pl
from jax.experimental.pallas import tpu as pltpu


# -------------------- fused Pallas kernel --------------------

def _depthwise_up_kernel(x_ref, a_ref, bias_ref, mask_ref, o_ref, *, W, M):
    # x_ref   : (1, in_c, M)     one sample; channels on sublanes, flattened H*W on lanes
    # a_ref   : (9, out_c, in_c) folded per-tap weights (resident across grid steps)
    # bias_ref: (out_c, M)       border-aware bias map (resident)
    # mask_ref: (9, 1, M)        per-tap validity masks (resident)
    # o_ref   : (1, out_c, M)
    x = x_ref[0]                                   # (in_c, M)
    acc = bias_ref[...]                            # (out_c, M) f32 accumulator, lane-dense
    for t in range(9):                             # unrolled: 9 lane-rotates + 9 tiny MXU dots
        dy, dx = t // 3 - 1, t % 3 - 1
        s = dy * W + dx                            # flat-index offset of this tap
        # shifted[:, i] == x[:, i + s]  (wrap-around lanes are zeroed by the mask below)
        shifted = x if s == 0 else pltpu.roll(x, shift=(-s) % M, axis=1)
        piece = shifted * mask_ref[t]              # zero out-of-image / wrapped pixels
        acc = acc + jnp.dot(a_ref[t], piece, preferred_element_type=jnp.float32)
    # sigmoid: exp on the EUP; exact reciprocal keeps the 1e-4 tolerance (inf -> 0 limit is fine)
    o_ref[0] = pl.reciprocal(1.0 + jnp.exp(-acc), approx=False)


# -------------------- host-side weight folding (once per param set) --------------------

def fold_params(p):
    """Collapse total -> chunk -> point -> depthwise (+ biases) into:
       A (9, in_c, out_c), per-tap bias rows c_taps (9, out_c), summed depthwise bias bout."""
    in_c = p["w_total"].shape[0]
    depth_c = p["w_xp"].shape[0]
    out_c = p["w_xp"].shape[1]
    Wt = p["w_total"][:, :, 0, 0]                            # (in_c, 3*depth_c); ConvT: out = x @ W
    bt = p["b_total"]
    A = jnp.zeros((9, in_c, out_c), jnp.float32)
    c_taps = jnp.zeros((9, out_c), jnp.float32)
    bout = jnp.zeros((out_c,), jnp.float32)
    branches = (("w_xp", "b_xp", "w_xd", "b_xd"),
                ("w_yp", "b_yp", "w_yd", "b_yd"),
                ("w_zp", "b_zp", "w_zd", "b_zd"))
    for i, (wp, bp, wd, bd) in enumerate(branches):
        Wp = p[wp][:, :, 0, 0]                                        # (depth_c, out_c)
        w_eff = Wt[:, i * depth_c:(i + 1) * depth_c] @ Wp             # (in_c, out_c)
        b_eff = bt[i * depth_c:(i + 1) * depth_c] @ Wp + p[bp]        # (out_c,)
        # stride-1 ConvT(k=3, pad=1) == regular conv with spatially flipped kernel, pad=1
        wconv = p[wd][:, 0, ::-1, ::-1].reshape(out_c, 9)             # (out_c, 9), tap t = a*3+b
        A = A + w_eff[None, :, :] * wconv.T[:, None, :]               # (9, in_c, out_c)
        c_taps = c_taps + b_eff[None, :] * wconv.T                    # (9, out_c)
        bout = bout + p[bd]
    return A, c_taps, bout


def make_masks(H, W):
    """mask[t, 0, h*W+w] = 1 iff (h+dy_t, w+dx_t) lies inside the image, tap t = (dy+1)*3+(dx+1)."""
    hh = np.arange(H)[:, None]
    ww = np.arange(W)[None, :]
    m = np.zeros((9, H, W), np.float32)
    for t in range(9):
        dy, dx = t // 3 - 1, t % 3 - 1
        m[t] = ((hh + dy >= 0) & (hh + dy < H) & (ww + dx >= 0) & (ww + dx < W)).astype(np.float32)
    return m.reshape(9, 1, H * W)


# -------------------- public wrapper --------------------

def depthwise_up_forward(x_nchw, params):
    B, in_c, H, W = x_nchw.shape
    M = H * W
    A, c_taps, bout = fold_params(params)
    out_c = bout.shape[0]

    a_taps = jnp.transpose(A, (0, 2, 1))            # (9, out_c, in_c): lane-dense dot orientation
    masks = jnp.asarray(make_masks(H, W))           # (9, 1, M)
    # pointwise bias propagated through the zero-padded depthwise taps (+ summed depthwise bias);
    # spatially varying only on the 1-pixel border
    bias_map = bout[:, None] + jnp.einsum('to,tm->om', c_taps, masks.reshape(9, M))  # (out_c, M)

    # only layout glue left in the wrapper: free reshapes (channels-first kept end-to-end)
    x_flat = x_nchw.astype(jnp.float32).reshape(B, in_c, M)

    flops = 2 * B * M * 9 * in_c * out_c
    bytes_accessed = 4 * (B * in_c * M + a_taps.size + bias_map.size + masks.size + B * out_c * M)

    out = pl.pallas_call(
        functools.partial(_depthwise_up_kernel, W=W, M=M),
        out_shape=jax.ShapeDtypeStruct((B, out_c, M), jnp.float32),
        grid=(B,),
        in_specs=[
            pl.BlockSpec((1, in_c, M), lambda b: (b, 0, 0)),
            pl.BlockSpec((9, out_c, in_c), lambda b: (0, 0, 0)),   # resident across grid steps
            pl.BlockSpec((out_c, M), lambda b: (0, 0)),            # resident
            pl.BlockSpec((9, 1, M), lambda b: (0, 0, 0)),          # resident
        ],
        out_specs=pl.BlockSpec((1, out_c, M), lambda b: (b, 0, 0)),
        compiler_params=pltpu.CompilerParams(dimension_semantics=("parallel",)),
        cost_estimate=pl.CostEstimate(flops=flops, transcendentals=B * out_c * M,
                                      bytes_accessed=bytes_accessed),
    )(x_flat, a_taps, bias_map, masks)

    return out.reshape(B, out_c, H, W)              # already channel-major: free reshape to NCHW


# -------------------- pure-JAX reference (independent of the folding algebra) --------------------

def ref_forward(x, p):
    def convT1x1(h, w, b):                       # ConvTranspose2d(k=1): out = x . W[in,out] + b
        return jnp.einsum('bchw,cd->bdhw', h, w[:, :, 0, 0]) + b[None, :, None, None]

    def convT3x3_dw(h, w, b):                    # depthwise ConvTranspose2d(k=3, p=1, groups=C)
        wflip = w[:, :, ::-1, ::-1]              # (C,1,3,3) used as OIHW for grouped conv
        y = lax.conv_general_dilated(h, wflip, (1, 1), ((1, 1), (1, 1)),
                                     dimension_numbers=('NCHW', 'OIHW', 'NCHW'),
                                     feature_group_count=h.shape[1])
        return y + b[None, :, None, None]

    t = convT1x1(x, p["w_total"], p["b_total"])
    depth_c = p["w_xp"].shape[0]
    x1 = t[:, 0 * depth_c:1 * depth_c]
    x2 = t[:, 1 * depth_c:2 * depth_c]
    x3 = t[:, 2 * depth_c:3 * depth_c]
    y1 = convT3x3_dw(convT1x1(x1, p["w_xp"], p["b_xp"]), p["w_xd"], p["b_xd"])
    y2 = convT3x3_dw(convT1x1(x2, p["w_yp"], p["b_yp"]), p["w_yd"], p["b_yd"])
    y3 = convT3x3_dw(convT1x1(x3, p["w_zp"], p["b_zp"]), p["w_zd"], p["b_zd"])
    return jax.nn.sigmoid(y1 + y2 + y3)


# -------------------- deterministic parameter init --------------------

def init_params(key, in_c, depth_c, out_c):
    ks = jax.random.split(key, 14)
    n = lambda k, shape, s=0.2: s * jax.random.normal(k, shape, jnp.float32)
    return {
        "w_total": n(ks[0], (in_c, 3 * depth_c, 1, 1)), "b_total": n(ks[1], (3 * depth_c,)),
        "w_xp": n(ks[2], (depth_c, out_c, 1, 1)), "b_xp": n(ks[3], (out_c,)),
        "w_xd": n(ks[4], (out_c, 1, 3, 3)),        "b_xd": n(ks[5], (out_c,)),
        "w_yp": n(ks[6], (depth_c, out_c, 1, 1)), "b_yp": n(ks[7], (out_c,)),
        "w_yd": n(ks[8], (out_c, 1, 3, 3)),        "b_yd": n(ks[9], (out_c,)),
        "w_zp": n(ks[10], (depth_c, out_c, 1, 1)), "b_zp": n(ks[11], (out_c,)),
        "w_zd": n(ks[12], (out_c, 1, 3, 3)),       "b_zd": n(ks[13], (out_c,)),
    }


if __name__ == "__main__":
    key = jax.random.PRNGKey(0)
    kx, kp = jax.random.split(key)
    B, in_c, depth_c, out_c, H, W = 2, 4, 6, 8, 16, 16
    x = jax.random.normal(kx, (B, in_c, H, W), jnp.float32)
    params = init_params(kp, in_c, depth_c, out_c)

    out = depthwise_up_forward(x, params)
    out = jax.block_until_ready(out)
    assert out.shape == (B, out_c, H, W), out.shape

    ref = ref_forward(x, params)
    np.testing.assert_allclose(np.asarray(out), np.asarray(ref), atol=1e-4, rtol=1e-4)
    print("KERNEL_OK")
</pallas_src>

<mosaic_0001>
module attributes {stable_mosaic.version = 11 : i64} {
  func.func @_depthwise_up_kernel(%arg0: i32, %arg1: memref<1x4x256xf32, #tpu.memory_space<vmem>>, %arg2: memref<9x8x4xf32, #tpu.memory_space<vmem>>, %arg3: memref<8x256xf32, #tpu.memory_space<vmem>>, %arg4: memref<9x1x256xf32, #tpu.memory_space<vmem>>, %arg5: memref<1x8x256xf32, #tpu.memory_space<vmem>>) attributes {dimension_semantics = [#tpu.dimension_semantics<parallel>], iteration_bounds = array<i64: 2>, scalar_prefetch = 0 : i64, scratch_operands = 0 : i64, tpu.core_type = #tpu.core_type<tc>, window_params = [{transform_indices = @transform_0, window_bounds = array<i64: 1, 4, 256>}, {pipeline_mode = #tpu.pipeline_mode<synchronous>, transform_indices = @transform_1, window_bounds = array<i64: 9, 8, 4>}, {pipeline_mode = #tpu.pipeline_mode<synchronous>, transform_indices = @transform_2, window_bounds = array<i64: 8, 256>}, {pipeline_mode = #tpu.pipeline_mode<synchronous>, transform_indices = @transform_3, window_bounds = array<i64: 9, 1, 256>}, {transform_indices = @transform_4, window_bounds = array<i64: 1, 8, 256>}]} {
    %c0 = arith.constant 0 : index
    %c0_0 = arith.constant 0 : index
    %c0_1 = arith.constant 0 : index
    %0 = vector.load %arg1[%c0, %c0_0, %c0_1] : memref<1x4x256xf32, #tpu.memory_space<vmem>>, vector<1x4x256xf32>
    %1 = vector.shape_cast %0 : vector<1x4x256xf32> to vector<4x256xf32>
    %c0_2 = arith.constant 0 : index
    %c0_3 = arith.constant 0 : index
    %2 = vector.load %arg3[%c0_2, %c0_3] : memref<8x256xf32, #tpu.memory_space<vmem>>, vector<8x256xf32>
    %c17_i32 = arith.constant 17 : i32
    %3 = tpu.dynamic_rotate %1 by %c17_i32 dim 1 : vector<4x256xf32>, i32 -> vector<4x256xf32>
    %c0_4 = arith.constant 0 : index
    %c0_5 = arith.constant 0 : index
    %c0_6 = arith.constant 0 : index
    %4 = vector.load %arg4[%c0_4, %c0_5, %c0_6] : memref<9x1x256xf32, #tpu.memory_space<vmem>>, vector<1x1x256xf32>
    %5 = vector.shape_cast %4 : vector<1x1x256xf32> to vector<1x256xf32>
    %6 = vector.broadcast %5 : vector<1x256xf32> to vector<4x256xf32>
    %7 = arith.mulf %3, %6 : vector<4x256xf32>
    %c0_7 = arith.constant 0 : index
    %c0_8 = arith.constant 0 : index
    %c0_9 = arith.constant 0 : index
    %8 = vector.load %arg2[%c0_7, %c0_8, %c0_9] : memref<9x8x4xf32, #tpu.memory_space<vmem>>, vector<1x8x4xf32>
    %9 = vector.shape_cast %8 : vector<1x8x4xf32> to vector<8x4xf32>
    %cst = arith.constant dense<0.000000e+00> : vector<8x256xf32>
    %10 = tpu.matmul %9, %7, %cst {dimension_numbers = #tpu.dot_dimension_numbers<[1], [0], [0], [1], [0, 0, 1, 1], [], []>} : vector<8x4xf32>, vector<4x256xf32>, vector<8x256xf32> -> vector<8x256xf32>
    %11 = arith.addf %2, %10 : vector<8x256xf32>
    %c16_i32 = arith.constant 16 : i32
    %12 = tpu.dynamic_rotate %1 by %c16_i32 dim 1 : vector<4x256xf32>, i32 -> vector<4x256xf32>
    %c1 = arith.constant 1 : index
    %c0_10 = arith.constant 0 : index
    %c0_11 = arith.constant 0 : index
    %13 = vector.load %arg4[%c1, %c0_10, %c0_11] : memref<9x1x256xf32, #tpu.memory_space<vmem>>, vector<1x1x256xf32>
    %14 = vector.shape_cast %13 : vector<1x1x256xf32> to vector<1x256xf32>
    %15 = vector.broadcast %14 : vector<1x256xf32> to vector<4x256xf32>
    %16 = arith.mulf %12, %15 : vector<4x256xf32>
    %c1_12 = arith.constant 1 : index
    %c0_13 = arith.constant 0 : index
    %c0_14 = arith.constant 0 : index
    %17 = vector.load %arg2[%c1_12, %c0_13, %c0_14] : memref<9x8x4xf32, #tpu.memory_space<vmem>>, vector<1x8x4xf32>
    %18 = vector.shape_cast %17 : vector<1x8x4xf32> to vector<8x4xf32>
    %cst_15 = arith.constant dense<0.000000e+00> : vector<8x256xf32>
    %19 = tpu.matmul %18, %16, %cst_15 {dimension_numbers = #tpu.dot_dimension_numbers<[1], [0], [0], [1], [0, 0, 1, 1], [], []>} : vector<8x4xf32>, vector<4x256xf32>, vector<8x256xf32> -> vector<8x256xf32>
    %20 = arith.addf %11, %19 : vector<8x256xf32>
    %c15_i32 = arith.constant 15 : i32
    %21 = tpu.dynamic_rotate %1 by %c15_i32 dim 1 : vector<4x256xf32>, i32 -> vector<4x256xf32>
    %c2 = arith.constant 2 : index
    %c0_16 = arith.constant 0 : index
    %c0_17 = arith.constant 0 : index
    %22 = vector.load %arg4[%c2, %c0_16, %c0_17] : memref<9x1x256xf32, #tpu.memory_space<vmem>>, vector<1x1x256xf32>
    %23 = vector.shape_cast %22 : vector<1x1x256xf32> to vector<1x256xf32>
    %24 = vector.broadcast %23 : vector<1x256xf32> to vector<4x256xf32>
    %25 = arith.mulf %21, %24 : vector<4x256xf32>
    %c2_18 = arith.constant 2 : index
    %c0_19 = arith.constant 0 : index
    %c0_20 = arith.constant 0 : index
    %26 = vector.load %arg2[%c2_18, %c0_19, %c0_20] : memref<9x8x4xf32, #tpu.memory_space<vmem>>, vector<1x8x4xf32>
    %27 = vector.shape_cast %26 : vector<1x8x4xf32> to vector<8x4xf32>
    %cst_21 = arith.constant dense<0.000000e+00> : vector<8x256xf32>
    %28 = tpu.matmul %27, %25, %cst_21 {dimension_numbers = #tpu.dot_dimension_numbers<[1], [0], [0], [1], [0, 0, 1, 1], [], []>} : vector<8x4xf32>, vector<4x256xf32>, vector<8x256xf32> -> vector<8x256xf32>
    %29 = arith.addf %20, %28 : vector<8x256xf32>
    %c1_i32 = arith.constant 1 : i32
    %30 = tpu.dynamic_rotate %1 by %c1_i32 dim 1 : vector<4x256xf32>, i32 -> vector<4x256xf32>
    %c3 = arith.constant 3 : index
    %c0_22 = arith.constant 0 : index
    %c0_23 = arith.constant 0 : index
    %31 = vector.load %arg4[%c3, %c0_22, %c0_23] : memref<9x1x256xf32, #tpu.memory_space<vmem>>, vector<1x1x256xf32>
    %32 = vector.shape_cast %31 : vector<1x1x256xf32> to vector<1x256xf32>
    %33 = vector.broadcast %32 : vector<1x256xf32> to vector<4x256xf32>
    %34 = arith.mulf %30, %33 : vector<4x256xf32>
    %c3_24 = arith.constant 3 : index
    %c0_25 = arith.constant 0 : index
    %c0_26 = arith.constant 0 : index
    %35 = vector.load %arg2[%c3_24, %c0_25, %c0_26] : memref<9x8x4xf32, #tpu.memory_space<vmem>>, vector<1x8x4xf32>
    %36 = vector.shape_cast %35 : vector<1x8x4xf32> to vector<8x4xf32>
    %cst_27 = arith.constant dense<0.000000e+00> : vector<8x256xf32>
    %37 = tpu.matmul %36, %34, %cst_27 {dimension_numbers = #tpu.dot_dimension_numbers<[1], [0], [0], [1], [0, 0, 1, 1], [], []>} : vector<8x4xf32>, vector<4x256xf32>, vector<8x256xf32> -> vector<8x256xf32>
    %38 = arith.addf %29, %37 : vector<8x256xf32>
    %c4 = arith.constant 4 : index
    %c0_28 = arith.constant 0 : index
    %c0_29 = arith.constant 0 : index
    %39 = vector.load %arg4[%c4, %c0_28, %c0_29] : memref<9x1x256xf32, #tpu.memory_space<vmem>>, vector<1x1x256xf32>
    %40 = vector.shape_cast %39 : vector<1x1x256xf32> to vector<1x256xf32>
    %41 = vector.broadcast %40 : vector<1x256xf32> to vector<4x256xf32>
    %42 = arith.mulf %1, %41 : vector<4x256xf32>
    %c4_30 = arith.constant 4 : index
    %c0_31 = arith.constant 0 : index
    %c0_32 = arith.constant 0 : index
    %43 = vector.load %arg2[%c4_30, %c0_31, %c0_32] : memref<9x8x4xf32, #tpu.memory_space<vmem>>, vector<1x8x4xf32>
    %44 = vector.shape_cast %43 : vector<1x8x4xf32> to vector<8x4xf32>
    %cst_33 = arith.constant dense<0.000000e+00> : vector<8x256xf32>
    %45 = tpu.matmul %44, %42, %cst_33 {dimension_numbers = #tpu.dot_dimension_numbers<[1], [0], [0], [1], [0, 0, 1, 1], [], []>} : vector<8x4xf32>, vector<4x256xf32>, vector<8x256xf32> -> vector<8x256xf32>
    %46 = arith.addf %38, %45 : vector<8x256xf32>
    %c255_i32 = arith.constant 255 : i32
    %47 = tpu.dynamic_rotate %1 by %c255_i32 dim 1 : vector<4x256xf32>, i32 -> vector<4x256xf32>
    %c5 = arith.constant 5 : index
    %c0_34 = arith.constant 0 : index
    %c0_35 = arith.constant 0 : index
    %48 = vector.load %arg4[%c5, %c0_34, %c0_35] : memref<9x1x256xf32, #tpu.memory_space<vmem>>, vector<1x1x256xf32>
    %49 = vector.shape_cast %48 : vector<1x1x256xf32> to vector<1x256xf32>
    %50 = vector.broadcast %49 : vector<1x256xf32> to vector<4x256xf32>
    %51 = arith.mulf %47, %50 : vector<4x256xf32>
    %c5_36 = arith.constant 5 : index
    %c0_37 = arith.constant 0 : index
    %c0_38 = arith.constant 0 : index
    %52 = vector.load %arg2[%c5_36, %c0_37, %c0_38] : memref<9x8x4xf32, #tpu.memory_space<vmem>>, vector<1x8x4xf32>
    %53 = vector.shape_cast %52 : vector<1x8x4xf32> to vector<8x4xf32>
    %cst_39 = arith.constant dense<0.000000e+00> : vector<8x256xf32>
    %54 = tpu.matmul %53, %51, %cst_39 {dimension_numbers = #tpu.dot_dimension_numbers<[1], [0], [0], [1], [0, 0, 1, 1], [], []>} : vector<8x4xf32>, vector<4x256xf32>, vector<8x256xf32> -> vector<8x256xf32>
    %55 = arith.addf %46, %54 : vector<8x256xf32>
    %c241_i32 = arith.constant 241 : i32
    %56 = tpu.dynamic_rotate %1 by %c241_i32 dim 1 : vector<4x256xf32>, i32 -> vector<4x256xf32>
    %c6 = arith.constant 6 : index
    %c0_40 = arith.constant 0 : index
    %c0_41 = arith.constant 0 : index
    %57 = vector.load %arg4[%c6, %c0_40, %c0_41] : memref<9x1x256xf32, #tpu.memory_space<vmem>>, vector<1x1x256xf32>
    %58 = vector.shape_cast %57 : vector<1x1x256xf32> to vector<1x256xf32>
    %59 = vector.broadcast %58 : vector<1x256xf32> to vector<4x256xf32>
    %60 = arith.mulf %56, %59 : vector<4x256xf32>
    %c6_42 = arith.constant 6 : index
    %c0_43 = arith.constant 0 : index
    %c0_44 = arith.constant 0 : index
    %61 = vector.load %arg2[%c6_42, %c0_43, %c0_44] : memref<9x8x4xf32, #tpu.memory_space<vmem>>, vector<1x8x4xf32>
    %62 = vector.shape_cast %61 : vector<1x8x4xf32> to vector<8x4xf32>
    %cst_45 = arith.constant dense<0.000000e+00> : vector<8x256xf32>
    %63 = tpu.matmul %62, %60, %cst_45 {dimension_numbers = #tpu.dot_dimension_numbers<[1], [0], [0], [1], [0, 0, 1, 1], [], []>} : vector<8x4xf32>, vector<4x256xf32>, vector<8x256xf32> -> vector<8x256xf32>
    %64 = arith.addf %55, %63 : vector<8x256xf32>
    %c240_i32 = arith.constant 240 : i32
    %65 = tpu.dynamic_rotate %1 by %c240_i32 dim 1 : vector<4x256xf32>, i32 -> vector<4x256xf32>
    %c7 = arith.constant 7 : index
    %c0_46 = arith.constant 0 : index
    %c0_47 = arith.constant 0 : index
    %66 = vector.load %arg4[%c7, %c0_46, %c0_47] : memref<9x1x256xf32, #tpu.memory_space<vmem>>, vector<1x1x256xf32>
    %67 = vector.shape_cast %66 : vector<1x1x256xf32> to vector<1x256xf32>
    %68 = vector.broadcast %67 : vector<1x256xf32> to vector<4x256xf32>
    %69 = arith.mulf %65, %68 : vector<4x256xf32>
    %c7_48 = arith.constant 7 : index
    %c0_49 = arith.constant 0 : index
    %c0_50 = arith.constant 0 : index
    %70 = vector.load %arg2[%c7_48, %c0_49, %c0_50] : memref<9x8x4xf32, #tpu.memory_space<vmem>>, vector<1x8x4xf32>
    %71 = vector.shape_cast %70 : vector<1x8x4xf32> to vector<8x4xf32>
    %cst_51 = arith.constant dense<0.000000e+00> : vector<8x256xf32>
    %72 = tpu.matmul %71, %69, %cst_51 {dimension_numbers = #tpu.dot_dimension_numbers<[1], [0], [0], [1], [0, 0, 1, 1], [], []>} : vector<8x4xf32>, vector<4x256xf32>, vector<8x256xf32> -> vector<8x256xf32>
    %73 = arith.addf %64, %72 : vector<8x256xf32>
    %c239_i32 = arith.constant 239 : i32
    %74 = tpu.dynamic_rotate %1 by %c239_i32 dim 1 : vector<4x256xf32>, i32 -> vector<4x256xf32>
    %c8 = arith.constant 8 : index
    %c0_52 = arith.constant 0 : index
    %c0_53 = arith.constant 0 : index
    %75 = vector.load %arg4[%c8, %c0_52, %c0_53] : memref<9x1x256xf32, #tpu.memory_space<vmem>>, vector<1x1x256xf32>
    %76 = vector.shape_cast %75 : vector<1x1x256xf32> to vector<1x256xf32>
    %77 = vector.broadcast %76 : vector<1x256xf32> to vector<4x256xf32>
    %78 = arith.mulf %74, %77 : vector<4x256xf32>
    %c8_54 = arith.constant 8 : index
    %c0_55 = arith.constant 0 : index
    %c0_56 = arith.constant 0 : index
    %79 = vector.load %arg2[%c8_54, %c0_55, %c0_56] : memref<9x8x4xf32, #tpu.memory_space<vmem>>, vector<1x8x4xf32>
    %80 = vector.shape_cast %79 : vector<1x8x4xf32> to vector<8x4xf32>
    %cst_57 = arith.constant dense<0.000000e+00> : vector<8x256xf32>
    %81 = tpu.matmul %80, %78, %cst_57 {dimension_numbers = #tpu.dot_dimension_numbers<[1], [0], [0], [1], [0, 0, 1, 1], [], []>} : vector<8x4xf32>, vector<4x256xf32>, vector<8x256xf32> -> vector<8x256xf32>
    %82 = arith.addf %73, %81 : vector<8x256xf32>
    %cst_58 = arith.constant 0.000000e+00 : f32
    %83 = vector.broadcast %cst_58 : f32 to vector<8x256xf32>
    %84 = arith.subf %83, %82 : vector<8x256xf32>
    %85 = math.exp %84 : vector<8x256xf32>
    %cst_59 = arith.constant 1.000000e+00 : f32
    %86 = vector.broadcast %cst_59 : f32 to vector<8x256xf32>
    %87 = arith.addf %86, %85 : vector<8x256xf32>
    %88 = tpu.reciprocal %87 : vector<8x256xf32> -> vector<8x256xf32>
    %c0_60 = arith.constant 0 : index
    %c0_61 = arith.constant 0 : index
    %c0_62 = arith.constant 0 : index
    %89 = vector.load %arg5[%c0_60, %c0_61, %c0_62] : memref<1x8x256xf32, #tpu.memory_space<vmem>>, vector<1x8x256xf32>
    %90 = vector.shape_cast %89 : vector<1x8x256xf32> to vector<8x256xf32>
    %91 = vector.shape_cast %88 : vector<8x256xf32> to vector<1x8x256xf32>
    tpu.vector_store %arg5[%c0_60, %c0_61, %c0_62], %91 {strides = array<i32>} : memref<1x8x256xf32, #tpu.memory_space<vmem>>, vector<1x8x256xf32>,
    return
  }
  func.func @transform_0(%arg0: i32) -> (i32, i32, i32) {
    %c0_i32 = arith.constant 0 : i32
    %c0_i32_0 = arith.constant 0 : i32
    %c0_i32_1 = arith.constant 0 : i32
    return %arg0, %c0_i32, %c0_i32_0 : i32, i32, i32
  }
  func.func @transform_1(%arg0: i32) -> (i32, i32, i32) {
    %c0_i32 = arith.constant 0 : i32
    %c0_i32_0 = arith.constant 0 : i32
    %c0_i32_1 = arith.constant 0 : i32
    %c0_i32_2 = arith.constant 0 : i32
    return %c0_i32, %c0_i32_0, %c0_i32_1 : i32, i32, i32
  }
  func.func @transform_2(%arg0: i32) -> (i32, i32) {
    %c0_i32 = arith.constant 0 : i32
    %c0_i32_0 = arith.constant 0 : i32
    %c0_i32_1 = arith.constant 0 : i32
    return %c0_i32, %c0_i32_0 : i32, i32
  }
  func.func @transform_3(%arg0: i32) -> (i32, i32, i32) {
    %c0_i32 = arith.constant 0 : i32
    %c0_i32_0 = arith.constant 0 : i32
    %c0_i32_1 = arith.constant 0 : i32
    %c0_i32_2 = arith.constant 0 : i32
    return %c0_i32, %c0_i32_0, %c0_i32_1 : i32, i32, i32
  }
  func.func @transform_4(%arg0: i32) -> (i32, i32, i32) {
    %c0_i32 = arith.constant 0 : i32
    %c0_i32_0 = arith.constant 0 : i32
    %c0_i32_1 = arith.constant 0 : i32
    return %arg0, %c0_i32, %c0_i32_0 : i32, i32, i32
  }
}

</mosaic_0001>

<bundles_post_ra>
// kernel: tpu_custom_call.1
= control target key start
LH: loop header
LB: loop body
LE: loop exit
PB: predicated region body
PF: predicated region fallthrough
CT: control target
= control target key end

     0   :  { %9 = vsyncpa [#allocation3], 0  ;;  %s1693_s0 = inlined_call_operand.vmem [shape: f32[2,4,256], index: 0, kind: input, shape index: {}]   ;;  %s1694_s1 = inlined_call_operand.vmem [shape: f32[9,8,4], index: 1, kind: input, shape index: {}]   ;;  %s1695_s2 = inlined_call_operand.vmem [shape: f32[8,256], index: 2, kind: input, shape index: {}]   ;;  %s1696_s3 = inlined_call_operand.vmem [shape: f32[9,1,256], index: 3, kind: input, shape index: {}]   ;;  %s1697_s4 = inlined_call_operand.hbm [shape: f32[2,8,256], index: 4, kind: output, shape index: {}]  }
   0x1   :  { %11 = vsyncpa [#allocation3 + $0x1], 0  ;;  %s1447_s15 = smov 0   ;;  %s1449_s16 = smov 0  }
   0x2   :  { %s1451_s17 = smov 0   ;;  %s1453_s18 = smov 0  }
   0x3 LB: > { %s1468_s19 = sadd.s32 4294967295, %s1410_s18   ;;  %s1236_s20 = sadd.s32 4294967294, %s1410_s18   ;;  %s1410_s18 = sphi %s1453_s18, %s1703_s18   ;;  %s1406_s17 = sphi %s1451_s17, %s1702_s17   ;;  %s1402_s16 = sphi %s1449_s16, %s1701_s16   ;;  %s1398_s15 = sphi %s1447_s15, %s1700_s15  }
   0x4   : > { %s1472_s21 = sadd.s32 1, %s1410_s18   ;;  %s113_s22 = sadd.s32 1, %s1406_s17 }
   0x5   : > { %s110_s23 = ssub.s32 %s1410_s18, %s1472_s21  ;;  %p123_p0 = scmp.ne.s32.totalorder %s1406_s17, %s1402_s16 }
   0x6   : > { %p111_p1 = scmp.eq.s32.totalorder %s110_s23, 0  ;;  %p124_p2 = scmp.eq.s32.totalorder %s1468_s19, 1 }
   0x7   : > { %p129_p3 = scmp.ne.s32.totalorder %s1402_s16, %s1398_s15  ;;  %p130_p4 = scmp.eq.s32.totalorder %s1236_s20, 1 }
   0x8   : > { %s1483_s24 = scalar_select %p111_p1, %s1406_s17, %s113_s22  }
   0x9   : > { %p1485_p5 = por %p124_p2, %p123_p0  ;;  %p1489_p6 = por %p130_p4, %p129_p3 }
   0xa   : > { %p1239_p7 = scmp.ge.s32.totalorder %s1410_s18, 1  ;;  %p165_p8 = scmp.lt.s32.totalorder %s1410_s18, 3 }
   0xc   : > { %p166_p9 = pnand %p1239_p7, %p165_p8 }
   0xd   : > { %p191_p10 = scmp.lt.s32.totalorder (!%p166_p9), %s1468_s19, 1  ;;  %s1412_s6 = smov (!%p166_p9), 16  }
   0xe   : > { %169 = sbr.rel (%p166_p9) target bundleno = 416 (0x1a0), region = 36  ;;  %s1413_s7 = smov (!%p166_p9), 17  }
   0xf   : > { %s1415_s8 = smov (!%p166_p9), 15   ;;  %s1416_s9 = smov (!%p166_p9), 1  }
  0x10   : > { %s1417_s10 = smov (!%p166_p9), 127   ;;  %s1418_s11 = smov (!%p166_p9), 113  }
  0x11   : > { %s1419_s12 = smov (!%p166_p9), 112   ;;  %s1420_s13 = smov (!%p166_p9), 111  }
  0x12   : > { %s188_s29 = sand.u32 (!%p166_p9), 1, %s1402_s16  }
  0x13   : > { %s192_s27 = scalar_select %p191_p10, %s1468_s19, 1  ;;  %v1414_v2 = vmov 0.0   ;;  %v206_v3 = vlaneseq  ;;  %v1261_v5 = vld [vmem:[%s1696_s3 + $0x8] sm:$0x3]  ;;  %v1246_v9 = vld [vmem:[%s1696_s3 + $0x2] sm:$0x3] }
  0x14   : > { %301 = vmatprep.mubr.f32.mxu0 %v1414_v2  ;;  %407 = vmatprep.mubr.f32.mxu1 %v1414_v2  ;;  %v211_v16 = vld [vmem:[%s1696_s3] sm:$0x3]  ;;  %vm230_vm1 = vcmask 1043456   ;;  %v1251_v22 = vld [vmem:[%s1696_s3 + $0x4] sm:$0x3]  ;;  %v1247_v28 = vld [vmem:[%s1694_s1 + $0x8] sm:$0xff] }
  0x15   : > { %s1291_s28 = sshll.u32 %s192_s27, 3  ;;  %v214_v4 = vshrl.u32 %v206_v3, 7  ;;  %v1517_v6 = vand.u32 127, %v206_v3  ;;  %v1256_v23 = vld [vmem:[%s1696_s3 + $0x6] sm:$0x3]  ;;  %vm226_vm5 = vcmask 31744  }
  0x16   : > { %s195_s5 = scalar_lea.vmem %s1693_s0, %s1291_s28  ;;  %v1266_v42 = vld [vmem:[%s1696_s3 + $0xa] sm:$0x3]  ;;  %v225_v43 = vld [vmem:[%s1694_s1] sm:$0xff]  ;;  %v1271_v55 = vld [vmem:[%s1696_s3 + $0xc] sm:$0x3]  ;;  %s1240_s30 = sshll.u32 %s188_s29, 4 }
  0x17   : > { %v1500_v0 = vld [vmem:[%s195_s5] sm:$0xff]  ;;  %v1519_v7 = vsub.s32 0, %v214_v4  ;;  %v1521_v8 = vsub.s32 1, %v214_v4  ;;  %vm314_vm0 = vcmp.lt.s32.totalorder %v1517_v6, 16  ;;  %vm420_vm2 = vcmp.lt.s32.totalorder %v1517_v6, 15  ;;  %v1252_v56 = vld [vmem:[%s1694_s1 + $0x10] sm:$0xff] }
  0x18   : > { %310 = vrot.lane.b32.xlu1 %v1500_v0, %s1412_s6  ;;  %202 = vrot.lane.b32.xlu0 %v1500_v0, %s1413_s7  ;;  %v200_v1 = vcombine.high %v1500_v0, %v1500_v0  ;;  %vm208_vm3 = vcmp.lt.s32.totalorder %v1517_v6, 17  ;;  %vm526_vm4 = vcmp.lt.s32.totalorder %v1517_v6, 1  ;;  %vm730_vm6 = vcmp.lt.s32.totalorder %v1517_v6, 127  ;;  %v1257_v57 = vld [vmem:[%s1694_s1 + $0x18] sm:$0xff]  ;;  %v1276_v3 = vld [vmem:[%s1696_s3 + $0xe] sm:$0x3] }
  0x19   : > { %v634_v12 = vrot.slane %v1261_v5, %v1519_v7  ;;  %v638_v13 = vrot.slane %v1261_v5, %v1521_v8  ;;  %v323_v14 = vrot.slane %v1246_v9, %v1519_v7  ;;  %v327_v15 = vrot.slane %v1246_v9, %v1521_v8  ;;  %v1262_v4 = vld [vmem:[%s1694_s1 + $0x20] sm:$0xff]  ;;  %v1267_v5 = vld [vmem:[%s1694_s1 + $0x28] sm:$0xff]  ;;  %s1292_s5 = sshll.u32 %s1468_s19, 8 }
  0x1a   : > { %v216_v26 = vrot.slane %v211_v16, %v1519_v7  ;;  %v220_v27 = vrot.slane %v211_v16, %v1521_v8  ;;  %v429_v29 = vrot.slane %v1251_v22, %v1519_v7  ;;  %v433_v30 = vrot.slane %v1251_v22, %v1521_v8 }
  0x1b   : > { %v639_v19 = vcombine.low %v634_v12, %v638_v13  ;;  %v535_v33 = vrot.slane %v1256_v23, %v1519_v7  ;;  %v539_v41 = vrot.slane %v1256_v23, %v1521_v8  ;;  %v739_v51 = vrot.slane %v1266_v42, %v1519_v7 }
  0x1c   : > { %416 = vrot.lane.b32.xlu0 %v1500_v0, %s1415_s8  ;;  %312 = vrot.lane.b32.xlu1 %v200_v1, %s1412_s6  ;;  %v743_v54 = vrot.slane %v1266_v42, %v1521_v8  ;;  %v845_v62 = vrot.slane %v1271_v55, %v1519_v7  ;;  %vm836_vm7 = vcmp.lt.s32.totalorder %v1517_v6, 113  ;;  %v951_v13 = vrot.slane %v1276_v3, %v1519_v7  ;;  %s190_s6 = scalar_lea.vmem [#allocation2], %s1240_s30 }
  0x1d   : > { %v641_v34 = vmul.f32 %v639_v19, %v1500_v0  ;;  %vm942_vm8 = vcmp.lt.s32.totalorder %v1517_v6, 112  ;;  %v955_v16 = vrot.slane %v1276_v3, %v1521_v8  ;;  %vm1048_vm9 = vcmp.lt.s32.totalorder %v1517_v6, 111 }
  0x1f   : > { %v645_v47 = vcombine.high %v641_v34, %v641_v34 }
  0x20   : > { %418 = vrot.lane.b32.xlu1 %v200_v1, %s1415_s8  ;;  %204 = vrot.lane.b32.xlu0 %v200_v1, %s1413_s7  ;;  %s1177_s7 = sshll.u32 %s190_s6, 4  ;;  %s1178_s7 = int_to_ptr.vmem [resolvable:$true] %s1177_s7 }
  0x24   : > { %524 = vrot.lane.b32.xlu1 %v200_v1, %s1416_s9  ;;  %522 = vrot.lane.b32.xlu0 %v1500_v0, %s1416_s9 }
  0x28   : > { %728 = vrot.lane.b32.xlu1 %v200_v1, %s1417_s10  ;;  %726 = vrot.lane.b32.xlu0 %v1500_v0, %s1417_s10  ;;  %s1658_s10 = scalar_lea.hbm %s1697_s4, %s1292_s5 }
  0x2c   : > { %834 = vrot.lane.b32.xlu1 %v200_v1, %s1418_s11  ;;  %832 = vrot.lane.b32.xlu0 %v1500_v0, %s1418_s11  ;;  %s1163_s11 = scalar_lea.sflag [#allocation3], %s188_s29 }
  0x30   : > { %940 = vrot.lane.b32.xlu1 %v200_v1, %s1419_s12  ;;  %938 = vrot.lane.b32.xlu0 %v1500_v0, %s1419_s12  ;;  %s1350_s12 = scalar_lea.vmem %s1178_s7, 256 }
  0x31   : > { %p1351_p11 = scmp.ne.s32.totalorder %s1178_s7, %s1350_s12 }
  0x33   : > { %p1352_p12 = pnand %p1351_p11, %p1485_p5 }
  0x34   : > { %1046 = vrot.lane.b32.xlu1 %v200_v1, %s1420_s13  ;;  %1044 = vrot.lane.b32.xlu0 %v1500_v0, %s1420_s13  ;;  %v849_v1 = vrot.slane %v1271_v55, %v1521_v8  ;;  %s1421_s13 = smov [#allocation2]  }
  0x35   : > { %p1353_p13 = pneg %p1352_p12  ;;  %s1354_s19 = sshll.u32 %s1421_s13, 4  ;;  %s1355_s19 = int_to_ptr.vmem [resolvable:$false] %s1354_s19 }
  0x36   : > { %s1356_s14 = scalar_lea.vmem %s1355_s19, 512  ;;  %p1357_p0 = scmp.lt.s32.totalorder %s1178_s7, %s1355_s19 }
  0x37   : > { %p1358_p1 = scmp.lt.s32.totalorder %s1356_s14, %s1350_s12 }
  0x39   : > { %p1359_p2 = por %p1358_p1, %p1357_p0 }
  0x3b   : > { %p1360_p3 = pnand %p1359_p2, %p1353_p13 }
  0x8a   : > { %v311_v10 = vpop.permute.xlu1 %310  ;;  %v203_v11 = vpop.permute.xlu0 %202 }
  0x8e   : > { %v417_v17 = vpop.permute.xlu0 %416  ;;  %v313_v18 = vpop.permute.xlu1 %312 }
  0x8f   : > { %v315_v20 = vsel %vm314_vm0, %v311_v10, %v313_v18  ;;  %v316_v21 = vsel %vm314_vm0, %v313_v18, %v311_v10  ;;  %v1272_v18 = vld [vmem:[%s1694_s1 + $0x30] sm:$0xff] }
  0x90   : > { %v330_v24 = vmul.f32 %v323_v14, %v316_v21  ;;  %v331_v25 = vmul.f32 %v327_v15, %v315_v20 }
  0x92   : > { %1248 = vmatprep.subr.msk.mxu1 %vm230_vm1, %v331_v25  ;;  %v419_v31 = vpop.permute.xlu1 %418  ;;  %v205_v32 = vpop.permute.xlu0 %204 }
  0x93   : > { %v421_v35 = vsel %vm420_vm2, %v417_v17, %v419_v31  ;;  %v209_v36 = vsel %vm208_vm3, %v203_v11, %v205_v32  ;;  %v210_v37 = vsel %vm208_vm3, %v205_v32, %v203_v11  ;;  %1249 = vmatpush1.msk.msra.mxu1 %vm230_vm1, %v330_v24  ;;  %v422_v38 = vsel %vm420_vm2, %v419_v31, %v417_v17  ;;  %v1281_v17 = vld [vmem:[%s1696_s3 + $0x10] sm:$0x3]  ;;  %v197_v32 = vld [vmem:[%s1695_s2] sm:$0xff] }
  0x94   : > { %v223_v39 = vmul.f32 %v216_v26, %v210_v37  ;;  %v224_v40 = vmul.f32 %v220_v27, %v209_v36  ;;  %1250 = vmatmul.mubr.msk.f32.vlgmr.msra.gmra.mxu1 %vm226_vm5, %v1247_v28  ;;  %v437_v44 = vmul.f32 %v433_v30, %v421_v35  ;;  %v436_v48 = vmul.f32 %v429_v29, %v422_v38  ;;  %v1277_v27 = vld [vmem:[%s1694_s1 + $0x38] sm:$0xff] }
  0x95   : > { %619 = vmatprep.mubr.f32.mxu1 %v1414_v2  ;;  %v1057_v25 = vrot.slane %v1281_v17, %v1519_v7  ;;  %v1061_v26 = vrot.slane %v1281_v17, %v1521_v8  ;;  %v1282_v8 = vld [vmem:[%s1694_s1 + $0x40] sm:$0xff] }
  0x96   : > { %v525_v45 = vpop.permute.xlu1 %524  ;;  %1243 = vmatprep.subr.msk.mxu0 %vm230_vm1, %v224_v40  ;;  %v523_v46 = vpop.permute.xlu0 %522 }
  0x97   : > { %v527_v49 = vsel %vm526_vm4, %v523_v46, %v525_v45  ;;  %v528_v50 = vsel %vm526_vm4, %v525_v45, %v523_v46  ;;  %1244 = vmatpush1.msk.msra.mxu0 %vm230_vm1, %v223_v39 }
  0x98   : > { %v542_v52 = vmul.f32 %v535_v33, %v528_v50  ;;  %v543_v53 = vmul.f32 %v539_v41, %v527_v49  ;;  %1253 = vmatprep.subr.msk.mxu0 %vm230_vm1, %v437_v44  ;;  %1245 = vmatmul.mubr.msk.f32.vlgmr.msra.gmra.mxu0 %vm226_vm5, %v225_v43 }
  0x99   : > { %1254 = vmatpush1.msk.msra.mxu0 %vm230_vm1, %v436_v48  ;;  %513 = vmatprep.mubr.f32.mxu0 %v1414_v2 }
  0x9a   : > { %v729_v58 = vpop.permute.xlu1 %728  ;;  %1258 = vmatprep.subr.msk.mxu1 %vm230_vm1, %v543_v53  ;;  %v727_v59 = vpop.permute.xlu0 %726  ;;  %1263 = vmatprep.subr.msk.mxu0 %vm230_vm1, %v645_v47 }
  0x9b   : > { %v731_v60 = vsel %vm730_vm6, %v727_v59, %v729_v58  ;;  %v732_v61 = vsel %vm730_vm6, %v729_v58, %v727_v59  ;;  %1259 = vmatpush1.msk.msra.mxu1 %vm230_vm1, %v542_v52 }
  0x9c   : > { %v746_v63 = vmul.f32 %v739_v51, %v731_v60  ;;  %v747_v0 = vmul.f32 %v743_v54, %v732_v61  ;;  %1255 = vmatmul.mubr.msk.f32.vlgmr.msra.gmra.mxu0 %vm226_vm5, %v1252_v56  ;;  %1260 = vmatmul.mubr.msk.f32.vlgmr.msra.gmra.mxu1 %vm226_vm5, %v1257_v57 }
  0x9d   : > { %1264 = vmatpush1.msk.msra.mxu0 %vm230_vm1, %v641_v34  ;;  %717 = vmatprep.mubr.f32.mxu0 %v1414_v2  ;;  %v198_v34 = vld [vmem:[%s1695_s2 + $0x8] sm:$0xff] }
  0x9e   : > { %v835_v9 = vpop.permute.xlu1 %834  ;;  %1268 = vmatprep.subr.msk.mxu1 %vm230_vm1, %v747_v0  ;;  %v833_v10 = vpop.permute.xlu0 %832  ;;  %823 = vmatprep.mubr.f32.mxu1 %v1414_v2 }
  0x9f   : > { %v837_v11 = vsel %vm836_vm7, %v833_v10, %v835_v9  ;;  %v838_v12 = vsel %vm836_vm7, %v835_v9, %v833_v10  ;;  %1269 = vmatpush1.msk.msra.mxu1 %vm230_vm1, %v746_v63 }
  0xa0   : > { %v852_v14 = vmul.f32 %v845_v62, %v837_v11  ;;  %v853_v15 = vmul.f32 %v849_v1, %v838_v12  ;;  %1265 = vmatmul.mubr.msk.f32.vlgmr.msra.gmra.mxu0 %vm226_vm5, %v1262_v4  ;;  %1270 = vmatmul.mubr.msk.f32.vlgmr.msra.gmra.mxu1 %vm226_vm5, %v1267_v5 }
  0xa1   : > { %929 = vmatprep.mubr.f32.mxu0 %v1414_v2  ;;  %1035 = vmatprep.mubr.f32.mxu1 %v1414_v2 }
  0xa2   : > { %v941_v19 = vpop.permute.xlu1 %940  ;;  %1273 = vmatprep.subr.msk.mxu0 %vm230_vm1, %v853_v15  ;;  %v939_v20 = vpop.permute.xlu0 %938 }
  0xa3   : > { %v943_v21 = vsel %vm942_vm8, %v939_v20, %v941_v19  ;;  %v944_v22 = vsel %vm942_vm8, %v941_v19, %v939_v20  ;;  %1274 = vmatpush1.msk.msra.mxu0 %vm230_vm1, %v852_v14 }
  0xa4   : > { %v958_v23 = vmul.f32 %v951_v13, %v943_v21  ;;  %v959_v24 = vmul.f32 %v955_v16, %v944_v22  ;;  %1275 = vmatmul.mubr.msk.f32.vlgmr.msra.gmra.mxu0 %vm226_vm5, %v1272_v18 }
  0xa5   : > { %1141 = vmatprep.mubr.f32.mxu0 %v1414_v2 }
  0xa6   : > { %v1047_v28 = vpop.permute.xlu1 %1046  ;;  %1278 = vmatprep.subr.msk.mxu1 %vm230_vm1, %v959_v24  ;;  %v1045_v29 = vpop.permute.xlu0 %1044 }
  0xa7   : > { %v1049_v30 = vsel %vm1048_vm9, %v1045_v29, %v1047_v28  ;;  %v1050_v6 = vsel %vm1048_vm9, %v1047_v28, %v1045_v29  ;;  %1279 = vmatpush1.msk.msra.mxu1 %vm230_vm1, %v958_v23 }
  0xa8   : > { %v1064_v31 = vmul.f32 %v1057_v25, %v1049_v30  ;;  %v1065_v7 = vmul.f32 %v1061_v26, %v1050_v6  ;;  %1280 = vmatmul.mubr.msk.f32.vlgmr.msra.gmra.mxu1 %vm226_vm5, %v1277_v27 }
  0xaa   : > { %1283 = vmatprep.subr.msk.mxu0 %vm230_vm1, %v1065_v7 }
  0xab   : > { %1284 = vmatpush1.msk.msra.mxu0 %vm230_vm1, %v1064_v31 }
  0xac   : > { %1285 = vmatmul.mubr.msk.f32.vlgmr.msra.gmra.mxu0 %vm226_vm5, %v1282_v8 }
 0x154   : > { %v409_v2 = vpop.f32.mrf.mxu1 }
 0x156   : > { %v411_v35 = vpop.f32.mrf.mxu1 }
 0x158   : > { %v303_v33 = vpop.f32.mrf.mxu0 }
 0x159   : > { %v308_v36 = vadd.f32 %v303_v33, %v197_v32 }
 0x15a   : > { %v305_v37 = vpop.f32.mrf.mxu0 }
 0x15b   : > { %v309_v38 = vadd.f32 %v305_v37, %v198_v34  ;;  %v414_v39 = vadd.f32 %v409_v2, %v308_v36 }
 0x15c   : > { %v515_v40 = vpop.f32.mrf.mxu0  ;;  %v621_v41 = vpop.f32.mrf.mxu1 }
 0x15d   : > { %v415_v42 = vadd.f32 %v411_v35, %v309_v38  ;;  %v520_v43 = vadd.f32 %v515_v40, %v414_v39 }
 0x15e   : > { %v517_v44 = vpop.f32.mrf.mxu0  ;;  %v623_v45 = vpop.f32.mrf.mxu1 }
 0x15f   : > { %v521_v46 = vadd.f32 %v517_v44, %v415_v42  ;;  %v626_v47 = vadd.f32 %v621_v41, %v520_v43 }
 0x160   : > { %v719_v48 = vpop.f32.mrf.mxu0  ;;  %v825_v49 = vpop.f32.mrf.mxu1 }
 0x161   : > { %v627_v50 = vadd.f32 %v623_v45, %v521_v46  ;;  %v724_v51 = vadd.f32 %v719_v48, %v626_v47 }
 0x162   : > { %v721_v52 = vpop.f32.mrf.mxu0  ;;  %v827_v53 = vpop.f32.mrf.mxu1 }
 0x163   : > { %v725_v54 = vadd.f32 %v721_v52, %v627_v50  ;;  %v830_v55 = vadd.f32 %v825_v49, %v724_v51 }
 0x164   : > { %v931_v56 = vpop.f32.mrf.mxu0 }
 0x165   : > { %v831_v57 = vadd.f32 %v827_v53, %v725_v54  ;;  %v936_v58 = vadd.f32 %v931_v56, %v830_v55 }
 0x166   : > { %v933_v59 = vpop.f32.mrf.mxu0 }
 0x167   : > { %v937_v61 = vadd.f32 %v933_v59, %v831_v57 }
 0x168   : > { %v1037_v60 = vpop.f32.mrf.mxu1 }
 0x169   : > { %v1042_v62 = vadd.f32 %v1037_v60, %v936_v58 }
 0x16a   : > { %v1039_v63 = vpop.f32.mrf.mxu1 }
 0x16b   : > { %v1043_v1 = vadd.f32 %v1039_v63, %v937_v61 }
 0x16c   : > { %v1143_v0 = vpop.f32.mrf.mxu0 }
 0x16d   : > { %v1148_v3 = vadd.f32 %v1143_v0, %v1042_v62 }
 0x16e   : > { %v1145_v4 = vpop.f32.mrf.mxu0 }
 0x16f   : > { %v1150_v5 = vsub.f32 0.0, %v1148_v3  ;;  %v1149_v9 = vadd.f32 %v1145_v4, %v1043_v1 }
 0x171   : > { %v1152_v10 = vmul.f32 1.442695, %v1150_v5  ;;  %v1151_v11 = vsub.f32 0.0, %v1149_v9 }
 0x173   : > { %1342 = vpow2.f32 %v1152_v10  ;;  %v1154_v12 = vmul.f32 1.442695, %v1151_v11 }
 0x175   : > { %1344 = vpow2.f32 %v1154_v12 }
 0x180   : > { %v1343_v13 = vpop.eup %1342 }
 0x181   : > { %v1156_v14 = vadd.f32 1.0, %v1343_v13 }
 0x182   : > { %v1345_v15 = vpop.eup %1344 }
 0x183   : > { %1346 = vrcp.f32 %v1156_v14  ;;  %v1157_v16 = vadd.f32 1.0, %v1345_v15 }
 0x185   : > { %1348 = vrcp.f32 %v1157_v16 }
 0x190   : > { %v1347_v17 = vpop.eup %1346 }
 0x191   : > { %1160 = vst [vmem:[%s190_s6] sm:$0xff] %v1347_v17 }
 0x192   : > { %v1349_v18 = vpop.eup %1348 }
 0x193   : > { %1161 = vst [vmem:[%s190_s6 + $0x8] sm:$0xff] %v1349_v18 }
 0x194   : > { %1363 = shalt.err (!%p1360_p3)
}
 0x195   : > { %s1364_s20 = scalar_lea.hbm %s1658_s10, 256  ;;  %s1368_s27 = scalar_lea.hbm %s1697_s4, 512 }
 0x196   : > { %p1365_p4 = scmp.ne.s32.totalorder %s1658_s10, %s1364_s20  ;;  %p1369_p9 = scmp.lt.s32.totalorder %s1658_s10, %s1697_s4 }
 0x197   : > { %p1370_p10 = scmp.lt.s32.totalorder %s1368_s27, %s1364_s20 }
 0x198   : > { %p1366_p7 = pnand %p1365_p4, %p1485_p5 }
 0x199   : > { %p1371_p11 = por %p1370_p10, %p1369_p9 }
 0x19a   : > { %p1367_p8 = pneg %p1366_p7 }
 0x19c   : > { %p1372_p12 = pnand %p1371_p11, %p1367_p8 }
 0x19e   : > { %1375 = shalt.err (!%p1372_p12)
}
 0x19f   : > { %1293 = dma.vmem_to_hbm [thread:$0]  (%p1485_p5), %s1178_s7, 256, %s1658_s10, %s1163_s11  }
 0x1a0 PF: > { %p1299_p13 = scmp.ge.s32.totalorder %s1410_s18, 2  ;;  %s1189_s30 = sand.u32 1, %s1398_s15  }
 0x1a1   : > { %s1190_s5 = scalar_lea.sflag [#allocation3], %s1189_s30 }
 0x1a2   : > { %p1296_p0 = pnand %p1299_p13, %p1489_p6 }
 0x1a4   : > { %p1297_p1 = pneg %p1296_p0 }
 0x1a6   : > { %1393 = dma.done.wait (%p1297_p1), %s1190_s5, 256  }
 0x1a7   : > { %1395 = vsyncadd (%p1297_p1), %s1190_s5, 4294967040  ;;  %p14_p2 = scmp.ge.s32.totalorder %s1472_s21, 4   ;;  %s1700_s15 = smov %s1402_s16 }
 0x1a8   : > { %s1701_s16 = smov %s1406_s17  ;;  %s1702_s17 = smov %s1483_s24 }
 0x1a9   : > { %s1703_s18 = smov %s1472_s21  ;;  %16 = sbr.rel (!%p14_p2) target bundleno = 3 (0x3), region = 87 }
 0x1ae   :  { %1195 = vsyncpa [#allocation3], 1 }
 0x1af   :  { %1197 = vsyncpa [#allocation3 + $0x1], 1 }

</bundles_post_ra>
